<compile_context>
chip_gen: v6e
topology: v6e:2x2x1
jax: 0.10.0
libtpu: 0.0.40
codegen_flags: <defaults>
</compile_context>

<pallas_src>
import jax
import jax.numpy as jnp
from jax.experimental import pallas as pl
from jax.experimental.pallas import tpu as pltpu


def _scale_kernel(x_ref, s_ref, o_ref):
    # x_ref: (row_blk, lane_blk) activation tile, in x.dtype.
    # s_ref: (row_blk, 1) or (1, lane_blk) f32 scale tile; jnp broadcasting
    #        handles either orientation identically.
    # Multiply in f32 (scale stays f32), cast the product exactly once.
    o_ref[...] = (x_ref[...] * s_ref[...]).astype(o_ref.dtype)


def _block_dims(R, L, itemsize, target_block_bytes):
    """Byte-budgeted, dtype-aware block sizing. Lane axis widened first."""
    row_mult = max(8, 32 // itemsize)  # sublane multiple: f32->8, bf16->16, int8/fp8->32
    # Lane block: multiple of 128 (or the full dim), capped at 4096 lanes.
    lane_cap = (target_block_bytes // (row_mult * itemsize)) // 128 * 128
    lane_cap = min(4096, max(128, lane_cap))
    lane_blk = L if L <= lane_cap else lane_cap
    # Row block: fill the remaining byte budget, multiple of row_mult (or full dim).
    max_rows = (target_block_bytes // (lane_blk * itemsize)) // row_mult * row_mult
    max_rows = max(row_mult, max_rows)
    row_blk = R if R <= max_rows else max_rows
    return row_blk, lane_blk, row_mult


def _maybe_split_for_megacore(R, L, row_blk, lane_blk, itemsize, row_mult):
    """v7x has 2 TensorCores: ensure mid-size inputs yield >= 2 grid blocks."""
    if pl.cdiv(R, row_blk) * pl.cdiv(L, lane_blk) > 1:
        return row_blk, lane_blk
    if R * L * itemsize < (1 << 20):       # tiny: splitting just adds overhead
        return row_blk, lane_blk
    if L >= 256:
        half = (L + 1) // 2
        lane_blk = max(128, -(-half // 128) * 128)       # ~half, multiple of 128
    elif R >= 2 * row_mult:
        half = (R + 1) // 2
        row_blk = max(row_mult, -(-half // row_mult) * row_mult)
    return row_blk, lane_blk


def _identity2d_pallas(x2d, scale2d, scale_along_rows, *, target_block_bytes,
                       donate_input):
    R, L = x2d.shape
    itemsize = x2d.dtype.itemsize

    row_blk, lane_blk, row_mult = _block_dims(R, L, itemsize, target_block_bytes)
    row_blk, lane_blk = _maybe_split_for_megacore(R, L, row_blk, lane_blk,
                                                  itemsize, row_mult)

    # Lane tiles are the innermost grid axis: the (row_blk, 1) scale block's
    # index (i, 0) is constant across it, so that tile stays resident.
    grid = (pl.cdiv(R, row_blk), pl.cdiv(L, lane_blk))

    if scale_along_rows:
        s_spec = pl.BlockSpec((row_blk, 1), lambda i, j: (i, 0))
    else:
        s_spec = pl.BlockSpec((1, lane_blk), lambda i, j: (0, j))

    return pl.pallas_call(
        _scale_kernel,
        out_shape=jax.ShapeDtypeStruct((R, L), x2d.dtype),
        grid_spec=pltpu.PrefetchScalarGridSpec(
            num_scalar_prefetch=0,
            grid=grid,
            in_specs=[
                pl.BlockSpec((row_blk, lane_blk), lambda i, j: (i, j)),
                s_spec,
            ],
            out_specs=pl.BlockSpec((row_blk, lane_blk), lambda i, j: (i, j)),
        ),
        compiler_params=pltpu.CompilerParams(
            dimension_semantics=("parallel", "parallel"),
            # ~4 MiB/block * 2 buffers * (in + out) + tiny scale ~= 16-17 MiB:
            # raise past v5e's 16 MiB default scope, stay far under v7x's 64 MiB.
            vmem_limit_bytes=48 << 20,
        ),
        input_output_aliases={0: 0} if donate_input else {},
    )(x2d, scale2d)


def identity2d(x, weight, weight_mask, *, min_pallas_bytes=2 << 20,
               target_block_bytes=4 << 20, donate_input=False):
    """Forward pass of Identity2d: x * (weight_mask * weight)."""
    N, C, H, W = x.shape
    assert weight.shape == (C, 1, 1)
    assert weight_mask.shape == (C, 1, 1)

    # Effective per-channel scale, kept in f32 so the kernel multiplies in f32
    # and casts the product once (matches the f32-promoting PyTorch reference).
    scale_c = (weight_mask.astype(jnp.float32)
               * weight.astype(jnp.float32)).reshape(C)

    # Small activations: XLA's fused elementwise beats pallas_call launch +
    # pipeline ramp below a few MiB.
    if x.size * x.dtype.itemsize < min_pallas_bytes:
        return (x * scale_c.reshape(1, C, 1, 1)).astype(x.dtype)

    HW = H * W
    if HW >= 128:
        # Lane-dense (N*C, H*W) with a per-row scale column.
        x2d = x.reshape(N * C, HW)
        scale2d = jnp.tile(scale_c, N).reshape(N * C, 1)   # row n*C + c -> scale_c[c]
        out2d = _identity2d_pallas(x2d, scale2d, True,
                                   target_block_bytes=target_block_bytes,
                                   donate_input=donate_input)
    else:
        # Tiny spatial dims (7x7, 14x14, ...): fold C into the lane axis so the
        # lane extent stays large; scale now varies along lanes.
        x2d = x.reshape(N, C * HW)
        scale2d = jnp.repeat(scale_c, HW).reshape(1, C * HW)
        out2d = _identity2d_pallas(x2d, scale2d, False,
                                   target_block_bytes=target_block_bytes,
                                   donate_input=donate_input)

    return out2d.reshape(N, C, H, W)


if __name__ == "__main__":
    # Deterministic inputs. reset_parameters() gives weight = ones, mask = ones;
    # we also test a non-trivial weight to verify the channel mapping.
    N, C, H, W = 2, 4, 16, 16
    key = jax.random.PRNGKey(0)
    x = jax.random.normal(key, (N, C, H, W), dtype=jnp.float32)

    weight = jnp.ones((C, 1, 1), dtype=jnp.float32)
    weight_mask = jnp.ones((C, 1, 1), dtype=jnp.float32)

    # Force the Pallas path at this small demo shape (row-scale mode, H*W=256).
    out = identity2d(x, weight, weight_mask, min_pallas_bytes=0)
    out = jax.block_until_ready(out)
    ref = x * (weight_mask * weight)
    assert out.shape == x.shape and out.dtype == x.dtype
    assert jnp.allclose(out, ref, atol=1e-6, rtol=1e-6)

    # Non-trivial per-channel scale: checks the row -> channel mapping.
    weight2 = (jnp.arange(C, dtype=jnp.float32) + 1.0).reshape(C, 1, 1)
    out2 = jax.block_until_ready(
        identity2d(x, weight2, weight_mask, min_pallas_bytes=0))
    ref2 = x * (weight_mask * weight2)
    assert jnp.allclose(out2, ref2, atol=1e-6, rtol=1e-6)

    # Small-spatial shape (7x7 < 128 lanes): exercises the lane-varying scale mode.
    xs = jax.random.normal(jax.random.PRNGKey(1), (N, C, 7, 7), dtype=jnp.float32)
    out3 = jax.block_until_ready(
        identity2d(xs, weight2, weight_mask, min_pallas_bytes=0))
    ref3 = xs * (weight_mask * weight2)
    assert jnp.allclose(out3, ref3, atol=1e-6, rtol=1e-6)

    # Wrapper's fused-XLA fallback path gives identical results.
    out_fb = jax.block_until_ready(identity2d(x, weight, weight_mask))
    assert jnp.allclose(out_fb, ref, atol=1e-6, rtol=1e-6)

    print("KERNEL_OK")
</pallas_src>

<mosaic_0001>
module attributes {stable_mosaic.version = 11 : i64} {
  func.func @_scale_kernel(%arg0: i32, %arg1: i32, %arg2: memref<8x256xf32, #tpu.memory_space<vmem>>, %arg3: memref<8x1xf32, #tpu.memory_space<vmem>>, %arg4: memref<8x256xf32, #tpu.memory_space<vmem>>) attributes {dimension_semantics = [#tpu.dimension_semantics<parallel>, #tpu.dimension_semantics<parallel>], iteration_bounds = array<i64: 1, 1>, scalar_prefetch = 0 : i64, scratch_operands = 0 : i64, tpu.core_type = #tpu.core_type<tc>, window_params = [{transform_indices = @transform_0, window_bounds = array<i64: 8, 256>}, {transform_indices = @transform_1, window_bounds = array<i64: 8, 1>}, {transform_indices = @transform_2, window_bounds = array<i64: 8, 256>}]} {
    %c0 = arith.constant 0 : index
    %c0_0 = arith.constant 0 : index
    %0 = vector.load %arg2[%c0, %c0_0] : memref<8x256xf32, #tpu.memory_space<vmem>>, vector<8x256xf32>
    %c0_1 = arith.constant 0 : index
    %c0_2 = arith.constant 0 : index
    %1 = vector.load %arg3[%c0_1, %c0_2] : memref<8x1xf32, #tpu.memory_space<vmem>>, vector<8x1xf32>
    %2 = vector.broadcast %1 : vector<8x1xf32> to vector<8x256xf32>
    %3 = arith.mulf %0, %2 : vector<8x256xf32>
    %c0_3 = arith.constant 0 : index
    %c0_4 = arith.constant 0 : index
    %4 = vector.load %arg4[%c0_3, %c0_4] : memref<8x256xf32, #tpu.memory_space<vmem>>, vector<8x256xf32>
    tpu.vector_store %arg4[%c0_3, %c0_4], %3 {strides = array<i32>} : memref<8x256xf32, #tpu.memory_space<vmem>>, vector<8x256xf32>,
    return
  }
  func.func @transform_0(%arg0: i32, %arg1: i32) -> (i32, i32) {
    %c0_i32 = arith.constant 0 : i32
    return %arg0, %arg1 : i32, i32
  }
  func.func @transform_1(%arg0: i32, %arg1: i32) -> (i32, i32) {
    %c0_i32 = arith.constant 0 : i32
    %c0_i32_0 = arith.constant 0 : i32
    return %arg0, %c0_i32 : i32, i32
  }
  func.func @transform_2(%arg0: i32, %arg1: i32) -> (i32, i32) {
    %c0_i32 = arith.constant 0 : i32
    return %arg0, %arg1 : i32, i32
  }
}

</mosaic_0001>

<bundles_post_ra>
// kernel: tpu_custom_call.1
= control target key start
LH: loop header
LB: loop body
LE: loop exit
PB: predicated region body
PF: predicated region fallthrough
CT: control target
= control target key end

     0   :  { %7 = vsyncpa [#allocation3], 0  ;;  %s126_s0 = inlined_call_operand.hbm [shape: f32[8,256], index: 0, kind: input, shape index: {}]   ;;  %s127_s1 = inlined_call_operand.vmem [shape: f32[8,1], index: 1, kind: input, shape index: {}]   ;;  %s128_s2 = inlined_call_operand.hbm [shape: f32[8,256], index: 2, kind: output, shape index: {}]  }
   0x1   :  { %8 = vsyncpa [#allocation4], 0  ;;  %s99_s9 = smov [#allocation2]  }
   0x2   :  { %s15_s10 = sshll.u32 %s99_s9, 4  ;;  %s16_s10 = int_to_ptr.vmem [resolvable:$true] %s15_s10 }
   0x3   :  { %s63_s11 = scalar_lea.vmem %s16_s10, 256  ;;  %p68_p1 = scmp.lt.s32.totalorder %s16_s10, %s16_s10 }
   0x4   :  { %p64_p0 = scmp.ne.s32.totalorder %s16_s10, %s63_s11  ;;  %p69_p2 = scmp.lt.s32.totalorder %s63_s11, %s63_s11 }
   0x6   :  { %p70_p3 = por %p69_p2, %p68_p1 }
   0x8   :  { %p71_p4 = pnand %p70_p3, %p64_p0 }
   0xa   :  { %74 = shalt.err (!%p71_p4)
}
   0xb   :  { %18 = dma.hbm_to_vmem [thread:$0]  %s126_s0, 256, %s16_s10, [#allocation3]  }
   0xc   :  { %95 = dma.done.wait [#allocation3], 256  }
   0xd   :  { %96 = vsyncadd [#allocation3], 4294967040  ;;  %v100_v0 = vmov 0   ;;  %v26_v1 = vld [vmem:[%s127_s1] sm:$0xff]  ;;  %v25_v3 = vld [vmem:[#allocation2 + $0x8] sm:$0xff]  ;;  %s101_s16 = smov [#allocation5]  }
   0xe   :  { %54 = vset.pattern.permute.xlu0 %v100_v0  ;;  %v24_v2 = vld [vmem:[#allocation2] sm:$0xff]  ;;  %s42_s17 = sshll.u32 %s101_s16, 4  ;;  %s43_s17 = int_to_ptr.vmem [resolvable:$true] %s42_s17 }
   0xf   :  { %29 = vperm.xlu0 %54, %v26_v1   ;;  %s75_s0 = scalar_lea.vmem %s43_s17, 256  ;;  %p80_p6 = scmp.lt.s32.totalorder %s43_s17, %s43_s17 }
  0x10   :  { %p76_p5 = scmp.ne.s32.totalorder %s43_s17, %s75_s0  ;;  %p81_p7 = scmp.lt.s32.totalorder %s75_s0, %s75_s0 }
  0x12   :  { %p82_p8 = por %p81_p7, %p80_p6 }
  0x14   :  { %p83_p9 = pnand %p82_p8, %p76_p5 }
  0x8a   :  { %v30_v4 = vpop.permute.xlu0 %29 }
  0x8b   :  { %v32_v5 = vmul.f32 %v30_v4, %v24_v2  ;;  %v33_v6 = vmul.f32 %v30_v4, %v25_v3 }
  0x8d   :  { %34 = vst [vmem:[#allocation5] sm:$0xff] %v32_v5  ;;  %35 = vst [vmem:[#allocation5 + $0x8] sm:$0xff] %v33_v6 }
  0x8e   :  { %86 = shalt.err (!%p83_p9)
}
  0x8f   :  { %45 = dma.vmem_to_hbm [thread:$0]  %s43_s17, 256, %s128_s2, [#allocation4]  }
  0x90   :  { %97 = dma.done.wait [#allocation4], 256  }
  0x91   :  { %98 = vsyncadd [#allocation4], 4294967040 }
  0x92   :  { %49 = vsyncpa [#allocation3], 1 }
  0x93   :  { %50 = vsyncpa [#allocation4], 1 }

</bundles_post_ra>
